<compile_context>
chip_gen: v7x
topology: tpu7x:2x2x1
jax: 0.10.0
libtpu: 0.0.40
codegen_flags: <defaults>
</compile_context>

<pallas_src>
import functools

import jax
import jax.numpy as jnp
from jax.experimental import pallas as pl
from jax.experimental.pallas import tpu as pltpu


def _round_up(x, m):
    return ((x + m - 1) // m) * m


def _proto_kernel(x_ref, w_ref, o_ref):
    # x_ref: (tm, D), w_ref: (D, tn), o_ref: (tm, tn). One MXU matmul per grid
    # point, f32 accumulation; cast of the x tile (if compute dtype differs)
    # happens here instead of as a separate XLA pass in the wrapper.
    x = x_ref[...]
    w = w_ref[...]
    if x.dtype != w.dtype:
        x = x.astype(w.dtype)
    o_ref[...] = jnp.dot(x, w, preferred_element_type=jnp.float32).astype(o_ref.dtype)


@functools.partial(
    jax.jit,
    static_argnames=("tm", "tn", "out_dtype", "resident", "k_outer"),
)
def fused_prototypes_matmul(x, w_cat, *, tm, tn, out_dtype, resident, k_outer):
    """out = x @ w_cat, tiled Pallas matmul.

    x: (N, D) — N need NOT be padded (edge blocks are masked by Pallas).
    w_cat: (D, K_pad), K_pad a multiple of 128.
    resident=True  -> 1-D grid over N, W kept resident in VMEM (single W DMA).
    resident=False -> 2-D tiled grid; k_outer picks which operand is re-streamed.
    """
    n, d = x.shape
    d2, k = w_cat.shape
    assert d == d2

    xi = jnp.dtype(x.dtype).itemsize
    wi = jnp.dtype(w_cat.dtype).itemsize
    oi = jnp.dtype(out_dtype).itemsize
    ni = pl.cdiv(n, tm)
    nj = pl.cdiv(k, tn)
    flops = 2 * n * d * k

    if resident:
        # W index_map is constant -> DMA'd exactly once, stays resident.
        grid = (ni,)
        in_specs = [
            pl.BlockSpec((tm, d), lambda i: (i, 0)),   # x row tile, D whole
            pl.BlockSpec((d, k), lambda i: (0, 0)),    # W whole, resident
        ]
        out_specs = pl.BlockSpec((tm, k), lambda i: (i, 0))
        semantics = ("parallel",)
        bytes_accessed = n * d * xi + d * k * wi + n * k * oi
    elif not k_outer:
        # N outer, K inner: x loaded once per row tile, W re-streamed ni times.
        grid = (ni, nj)
        in_specs = [
            pl.BlockSpec((tm, d), lambda i, j: (i, 0)),
            pl.BlockSpec((d, tn), lambda i, j: (0, j)),
        ]
        out_specs = pl.BlockSpec((tm, tn), lambda i, j: (i, j))
        semantics = ("parallel", "parallel")
        bytes_accessed = n * d * xi + ni * d * k * wi + n * k * oi
    else:
        # K outer, N inner: W loaded once per column tile, x re-streamed nj times.
        grid = (nj, ni)
        in_specs = [
            pl.BlockSpec((tm, d), lambda j, i: (i, 0)),
            pl.BlockSpec((d, tn), lambda j, i: (0, j)),
        ]
        out_specs = pl.BlockSpec((tm, tn), lambda j, i: (i, j))
        semantics = ("parallel", "parallel")
        bytes_accessed = nj * n * d * xi + d * k * wi + n * k * oi

    return pl.pallas_call(
        _proto_kernel,
        out_shape=jax.ShapeDtypeStruct((n, k), out_dtype),
        grid=grid,
        in_specs=in_specs,
        out_specs=out_specs,
        compiler_params=pltpu.CompilerParams(
            dimension_semantics=semantics,
            # 48 MiB: plenty for the resident path, still < v7x 64 MiB physical.
            vmem_limit_bytes=48 * 1024 * 1024,
        ),
        cost_estimate=pl.CostEstimate(
            flops=flops, transcendentals=0, bytes_accessed=bytes_accessed),
    )(x, w_cat)


class MultiPrototypes:
    """JAX/Pallas port of the PyTorch MultiPrototypes module (fused heads)."""

    _TM_MAX = 512          # row-tile cap (multiple of 8)
    _TN_MAX = 1024         # column-tile cap for the tiled fallback (multiple of 128)
    _VMEM_BUDGET = 44 * 1024 * 1024   # resident-path guard (v7x 64 MiB headroom)

    def __init__(self, output_dim, nmb_prototypes, key,
                 compute_dtype=jnp.float32, out_dtype=jnp.float32):
        self.nmb_heads = len(nmb_prototypes)
        self.nmb_prototypes = list(nmb_prototypes)
        self.output_dim = output_dim
        self.compute_dtype = compute_dtype
        self.out_dtype = out_dtype

        keys = jax.random.split(key, self.nmb_heads)
        bound = 1.0 / (output_dim ** 0.5)   # nn.Linear default init (no bias)

        self.weights_t = []      # per-head (D, k_i), unpadded, for reference
        self.head_offsets = []   # lane-aligned offsets into the fused output
        blocks = []
        off = 0
        for i, kk in enumerate(nmb_prototypes):
            w = jax.random.uniform(keys[i], (kk, output_dim), dtype=jnp.float32,
                                   minval=-bound, maxval=bound)
            w_t = jnp.transpose(w)                       # (D, k_i)
            self.weights_t.append(w_t)
            pk = _round_up(kk, 128)                      # per-head 128-aligned slot
            if pk > kk:
                w_t = jnp.pad(w_t, ((0, 0), (0, pk - kk)))
            blocks.append(w_t)
            self.head_offsets.append(off)
            off += pk
        self.k_pad = off                                 # multiple of 128
        self.w_cat = jnp.concatenate(blocks, axis=1).astype(compute_dtype)  # (D, K_pad)

    def __call__(self, x):
        n, d = x.shape
        assert d == self.output_dim
        k = self.k_pad
        xi = jnp.dtype(x.dtype).itemsize
        wi = jnp.dtype(self.w_cat.dtype).itemsize
        oi = jnp.dtype(self.out_dtype).itemsize

        # Row tile: either the full N (always a legal block) or the cap.
        tm = n if n <= self._TM_MAX else self._TM_MAX
        # v7x megacore: a 1-long "parallel" grid leaves one TensorCore idle;
        # split rows into (at least) 2 tiles when there is enough work.
        if -(-n // tm) == 1 and n >= 16:
            tm = _round_up(-(-n // 2), 8)

        # "W resident in VMEM" fast path guard: W counted double-buffered
        # (worst case) + double-buffered x/out tiles must fit the budget.
        def fits(tm_):
            return (2 * d * k * wi
                    + 2 * (tm_ * d * xi + tm_ * k * oi)) <= self._VMEM_BUDGET

        resident, tm_r = False, tm
        while True:
            if fits(tm_r):
                resident = True
                break
            if tm_r <= 8:
                break
            tm_r = max(8, ((tm_r // 2) // 8) * 8)

        if resident:
            out = fused_prototypes_matmul(
                x, self.w_cat, tm=tm_r, tn=k, out_dtype=self.out_dtype,
                resident=True, k_outer=False)
        else:
            # Tiled fallback (huge prototype counts): pick the grid-axis order
            # that re-streams the cheaper operand.
            tn = min(self._TN_MAX, k)
            ni = -(-n // tm)
            nj = -(-k // tn)
            k_outer = nj * n * d * xi < ni * d * k * wi
            out = fused_prototypes_matmul(
                x, self.w_cat, tm=tm, tn=tn, out_dtype=self.out_dtype,
                resident=False, k_outer=k_outer)

        # Per-head outputs: lane-aligned starts, cheap slices; padded columns
        # (zero weights) are dropped here, restoring exact PyTorch shapes.
        return [out[:, off:off + kk]
                for off, kk in zip(self.head_offsets, self.nmb_prototypes)]


if __name__ == "__main__":
    key = jax.random.PRNGKey(0)
    k_x, k_params, k_x2 = jax.random.split(key, 3)

    batch = 8
    output_dim = 32
    nmb_prototypes = [16, 8, 24]

    x = jax.random.normal(k_x, (batch, output_dim), dtype=jnp.float32)
    module = MultiPrototypes(output_dim, nmb_prototypes, k_params)

    refs = [jnp.matmul(x, w_t, precision=jax.lax.Precision.HIGHEST)
            for w_t in module.weights_t]

    # 1) Fast path: W resident in VMEM (single W DMA), 1-D grid over row tiles.
    outs = [jax.block_until_ready(o) for o in module(x)]
    for o, r, kk in zip(outs, refs, nmb_prototypes):
        assert o.shape == (batch, kk), o.shape
        assert jnp.allclose(o, r, atol=1e-4, rtol=1e-4), "resident path mismatch"

    # 2) Fallback path: force the 2-D tiled schedule (K-outer ordering here).
    module._VMEM_BUDGET = 0
    outs2 = [jax.block_until_ready(o) for o in module(x)]
    for o, r in zip(outs2, refs):
        assert jnp.allclose(o, r, atol=1e-4, rtol=1e-4), "tiled (k-outer) mismatch"

    # 3) Fallback path with many rows: exercises the N-outer tiled ordering.
    x2 = jax.random.normal(k_x2, (1024, output_dim), dtype=jnp.float32)
    refs2 = [jnp.matmul(x2, w_t, precision=jax.lax.Precision.HIGHEST)
             for w_t in module.weights_t]
    outs3 = [jax.block_until_ready(o) for o in module(x2)]
    for o, r in zip(outs3, refs2):
        assert jnp.allclose(o, r, atol=1e-4, rtol=1e-4), "tiled (n-outer) mismatch"

    print("KERNEL_OK")
</pallas_src>

<mosaic_0001>
module attributes {stable_mosaic.version = 11 : i64} {
  func.func @_proto_kernel(%arg0: i32, %arg1: memref<8x32xf32, #tpu.memory_space<vmem>>, %arg2: memref<32x384xf32, #tpu.memory_space<vmem>>, %arg3: memref<8x384xf32, #tpu.memory_space<vmem>>) attributes {dimension_semantics = [#tpu.dimension_semantics<parallel>], iteration_bounds = array<i64: 1>, scalar_prefetch = 0 : i64, scratch_operands = 0 : i64, tpu.core_type = #tpu.core_type<tc>, window_params = [{transform_indices = @transform_0, window_bounds = array<i64: 8, 32>}, {pipeline_mode = #tpu.pipeline_mode<synchronous>, transform_indices = @transform_1, window_bounds = array<i64: 32, 384>}, {transform_indices = @transform_2, window_bounds = array<i64: 8, 384>}]} {
    %c0 = arith.constant 0 : index
    %c0_0 = arith.constant 0 : index
    %0 = vector.load %arg1[%c0, %c0_0] : memref<8x32xf32, #tpu.memory_space<vmem>>, vector<8x32xf32>
    %c0_1 = arith.constant 0 : index
    %c0_2 = arith.constant 0 : index
    %1 = vector.load %arg2[%c0_1, %c0_2] : memref<32x384xf32, #tpu.memory_space<vmem>>, vector<32x384xf32>
    %cst = arith.constant dense<0.000000e+00> : vector<8x384xf32>
    %2 = tpu.matmul %0, %1, %cst {dimension_numbers = #tpu.dot_dimension_numbers<[1], [0], [0], [1], [0, 0, 1, 1], [], []>} : vector<8x32xf32>, vector<32x384xf32>, vector<8x384xf32> -> vector<8x384xf32>
    %c0_3 = arith.constant 0 : index
    %c0_4 = arith.constant 0 : index
    %3 = vector.load %arg3[%c0_3, %c0_4] : memref<8x384xf32, #tpu.memory_space<vmem>>, vector<8x384xf32>
    tpu.vector_store %arg3[%c0_3, %c0_4], %2 {strides = array<i32>} : memref<8x384xf32, #tpu.memory_space<vmem>>, vector<8x384xf32>,
    return
  }
  func.func @transform_0(%arg0: i32) -> (i32, i32) {
    %c0_i32 = arith.constant 0 : i32
    %c0_i32_0 = arith.constant 0 : i32
    return %arg0, %c0_i32 : i32, i32
  }
  func.func @transform_1(%arg0: i32) -> (i32, i32) {
    %c0_i32 = arith.constant 0 : i32
    %c0_i32_0 = arith.constant 0 : i32
    %c0_i32_1 = arith.constant 0 : i32
    return %c0_i32, %c0_i32_0 : i32, i32
  }
  func.func @transform_2(%arg0: i32) -> (i32, i32) {
    %c0_i32 = arith.constant 0 : i32
    %c0_i32_0 = arith.constant 0 : i32
    return %arg0, %c0_i32 : i32, i32
  }
}

</mosaic_0001>

<bundles_post_ra>
// kernel: fused_prototypes_matmul.1
= control target key start
LH: loop header
LB: loop body
LE: loop exit
PB: predicated region body
PF: predicated region fallthrough
CT: control target
= control target key end

     0   :  { %7 = vsyncpa [#allocation3], 0  ;;  %s393_s0 = inlined_call_operand.hbm [shape: f32[8,32], index: 0, kind: input, shape index: {}]   ;;  %s394_s1 = inlined_call_operand.hbm [shape: f32[32,384], index: 1, kind: input, shape index: {}]   ;;  %s395_s2 = inlined_call_operand.hbm [shape: f32[8,384], index: 2, kind: output, shape index: {}]  }
   0x1   :  { %8 = vsyncpa [#allocation6], 0 }
   0x2   :  { %9 = vsyncpa [#allocation4], 0  ;;  %s327_s9 = smov [#allocation2]   ;;  %s328_s11 = smov [#allocation5]  }
   0x3   :  { %s16_s10 = sshll.u32 %s327_s9, 4  ;;  %s25_s12 = sshll.u32 %s328_s11, 4  ;;  %s17_s10 = int_to_ptr.vmem [resolvable:$true] %s16_s10  ;;  %s350_s12 = int_to_ptr.vmem [resolvable:$true] %s25_s12 }
   0x4   :  { %s255_s15 = scalar_lea.hbm %s393_s0, 128 }
   0x5   :  { %p256_p0 = scmp.ne.s32.totalorder %s393_s0, %s255_s15  ;;  %p259_p1 = scmp.lt.u32.totalorder %s255_s15, %s393_s0 }
   0x7   :  { %p261_p2 = pnand %p259_p1, %p256_p0 }
   0x9   :  { %264 = shalt.err (!%p261_p2)
}
   0xa   :  { %s265_s20 = scalar_lea.vmem %s17_s10, 128  ;;  %p270_p4 = scmp.lt.s32.totalorder %s17_s10, %s17_s10 }
   0xb   :  { %p266_p3 = scmp.ne.s32.totalorder %s17_s10, %s265_s20  ;;  %p271_p5 = scmp.lt.s32.totalorder %s265_s20, %s265_s20 }
   0xd   :  { %p272_p6 = por %p271_p5, %p270_p4 }
   0xf   :  { %p273_p7 = pnand %p272_p6, %p266_p3 }
  0x11   :  { %276 = shalt.err (!%p273_p7)
}
  0x12   :  { %19 = dma.hbm_to_vmem [thread:$0]  %s393_s0, 128, %s17_s10, [#allocation3]  }
  0x13   :  { %s277_s25 = scalar_lea.hbm %s394_s1, 1536 }
  0x14   :  { %p278_p8 = scmp.ne.s32.totalorder %s394_s1, %s277_s25  ;;  %p281_p9 = scmp.lt.u32.totalorder %s277_s25, %s394_s1 }
  0x16   :  { %p283_p10 = pnand %p281_p9, %p278_p8 }
  0x18   :  { %286 = shalt.err (!%p283_p10)
}
  0x19   :  { %s287_s30 = scalar_lea.vmem %s350_s12, 1536  ;;  %p292_p12 = scmp.lt.s32.totalorder %s350_s12, %s350_s12 }
  0x1a   :  { %p288_p11 = scmp.ne.s32.totalorder %s350_s12, %s287_s30  ;;  %p293_p13 = scmp.lt.s32.totalorder %s287_s30, %s287_s30 }
  0x1c   :  { %p294_p0 = por %p293_p13, %p292_p12 }
  0x1e   :  { %p295_p1 = pnand %p294_p0, %p288_p11 }
  0x20   :  { %298 = shalt.err (!%p295_p1)
}
  0x21   :  { %s329_s0 = smov 384   ;;  %s330_s3 = smov 24  }
  0x22   :  { %31 = dma.hbm_to_vmem [thread:$0]  %s394_s1, 1536, %s350_s12, [#allocation6], %s329_s0, %s329_s0, %s330_s3  }
  0x23   :  { %321 = dma.done.wait [#allocation3], 128  }
  0x24   :  { %322 = vsyncadd [#allocation3], 4294967168 }
  0x25   :  { %323 = dma.done.wait [#allocation6], 1536  }
  0x26   :  { %324 = vsyncadd [#allocation6], 4294965760  ;;  %v331_v0 = vmov 0.0|0.0   ;;  %v332_v1 = vmov 0.0   ;;  %vm333_vm0 = vmmov 0   ;;  %v40_v2 = vld [vmem:[#allocation5 + $0x8] sm:$0xff] }
  0x27   :  { %241 = vmatprep.subr.bf16.mxu1 %v331_v0  ;;  %119 = vmatprep.mubr.f32.mxu0 %v332_v1  ;;  %v43_v3 = vld [vmem:[#allocation5 + $0x20] sm:$0xff]  ;;  %v42_v6 = vld [vmem:[#allocation5 + $0x18] sm:$0xff]  ;;  %v41_v7 = vld [vmem:[#allocation5 + $0x10] sm:$0xff]  ;;  %vm51_vm1 = vcmask 261120   ;;  %s334_s1 = smov [#allocation7]  }
  0x28   :  { %230 = vmatprep.mubr.msk.f32.mxu1 %vm333_vm0, %v332_v1  ;;  %v39_v4 = vld [vmem:[#allocation5] sm:$0xff]  ;;  %v233_v5 = vpack.c.bf16 %v43_v3, %v40_v2  ;;  %v44_v8 = vld [vmem:[#allocation5 + $0x28] sm:$0xff]  ;;  %v46_v11 = vld [vmem:[#allocation5 + $0x38] sm:$0xff]  ;;  %s205_s6 = sshll.u32 %s334_s1, 4  ;;  %s206_s6 = int_to_ptr.vmem [resolvable:$true] %s205_s6 }
  0x29   :  { %v235_v9 = vpack.c.bf16 %v42_v6, %v39_v4  ;;  %v242_v10 = vpack.c.bf16 %v44_v8, %v41_v7  ;;  %v49_v12 = vld [vmem:[#allocation5 + $0x50] sm:$0xff]  ;;  %v48_v15 = vld [vmem:[#allocation5 + $0x48] sm:$0xff]  ;;  %v47_v16 = vld [vmem:[#allocation5 + $0x40] sm:$0xff]  ;;  %s299_s7 = scalar_lea.vmem %s206_s6, 384  ;;  %p304_p3 = scmp.lt.s32.totalorder %s206_s6, %s206_s6 }
  0x2a   :  { %v45_v13 = vld [vmem:[#allocation5 + $0x30] sm:$0xff]  ;;  %234 = vmatprep.subr.bf16.mxu0 %v233_v5  ;;  %v237_v14 = vpack.c.bf16 %v49_v12, %v46_v11  ;;  %v50_v17 = vld [vmem:[#allocation5 + $0x58] sm:$0xff]  ;;  %p300_p2 = scmp.ne.s32.totalorder %s206_s6, %s299_s7  ;;  %p305_p4 = scmp.lt.s32.totalorder %s299_s7, %s299_s7 }
  0x2b   :  { %236 = vmatpush1.bf16.msra.mxu0 %v235_v9  ;;  %243 = vmatpush3.bf16.msra.mxu1 %v242_v10  ;;  %v239_v18 = vpack.c.bf16 %v48_v15, %v45_v13  ;;  %v245_v19 = vpack.c.bf16 %v50_v17, %v47_v16  ;;  %v38_v20 = vld [vmem:[#allocation2] sm:$0xff] }
  0x2c   :  { %238 = vmatprep.subr.bf16.mxu0 %v237_v14  ;;  %244 = vmatprep.subr.bf16.mxu1 %v331_v0  ;;  %p306_p5 = por %p305_p4, %p304_p3 }
  0x2e   :  { %p307_p6 = pnand %p306_p5, %p300_p2 }
  0x2f   :  { %240 = vmatpush1.bf16.msra.mxu0 %v239_v18  ;;  %246 = vmatpush3.bf16.msra.mxu1 %v245_v19 }
  0x32   :  { %215 = vmatmul.mubr.msk.f32.vlgmr.msra.gmra.mrb[0].mxu0 %vm51_vm1, %v38_v20  ;;  %231 = vmatmul.mubr.msk.f32.vlgmr.msra.gmra.mrb[0].mxu1 %vm51_vm1, %v38_v20 }
 0x105   :  { %v121_v21 = vpop.f32.mrb[0].mxu0  ;;  %v192_v22 = vpop.f32.mrb[0].mxu1 }
 0x106   :  { %196 = vst [vmem:[#allocation7] sm:$0xff] %v121_v21  ;;  %198 = vst [vmem:[#allocation7 + $0x10] sm:$0xff] %v192_v22  ;;  %v123_v23 = vpop.f32.mrb[1].mxu0  ;;  %v232_v24 = vpop.f32.mrb[1].mxu1 }
 0x107   :  { %197 = vst [vmem:[#allocation7 + $0x8] sm:$0xff] %v123_v23 }
 0x108   :  { %310 = shalt.err (!%p307_p6)
}
 0x109   :  { %s311_s10 = scalar_lea.hbm %s395_s2, 384 }
 0x10a   :  { %p312_p7 = scmp.ne.s32.totalorder %s395_s2, %s311_s10  ;;  %p315_p8 = scmp.lt.u32.totalorder %s311_s10, %s395_s2 }
 0x10c   :  { %p317_p9 = pnand %p315_p8, %p312_p7 }
 0x10e   :  { %320 = shalt.err (!%p317_p9)
}
 0x10f   :  { %208 = dma.vmem_to_hbm [thread:$0]  %s206_s6, 384, %s395_s2, [#allocation4]  }
 0x110   :  { %325 = dma.done.wait [#allocation4], 384  }
 0x111   :  { %326 = vsyncadd [#allocation4], 4294966912 }
 0x112   :  { %212 = vsyncpa [#allocation3], 1 }
 0x113   :  { %213 = vsyncpa [#allocation6], 1 }
 0x114   :  { %214 = vsyncpa [#allocation4], 1 }

</bundles_post_ra>
